<compile_context>
chip_gen: v5e
topology: v5e:2x2
jax: 0.10.0
libtpu: 0.0.40
codegen_flags: <defaults>
</compile_context>

<pallas_src>
import jax
import jax.numpy as jnp
from jax.experimental import pallas as pl
from jax.experimental.pallas import tpu as pltpu


def _mlp_kernel(px_ref, lt_ref, rgb_ref,
                w1p_ref, w1l_ref, w1r_ref, b1_ref,
                w2_ref, b2_ref, w3_ref, b3_ref, w4_ref, b4_ref,
                o_ref):
    # px:(2,TB)  lt:(2,TB)  rgb:(1,TB);  weights (out,in);  biases (out,1).
    x_p = px_ref[...]
    x_l = lt_ref[...]
    x_r = rgb_ref[...]
    w1p = w1p_ref[...]          # (16, 2)
    w1l = w1l_ref[...]          # (16, 2)
    w1r = w1r_ref[...]          # (16, 1)

    # Layer 1: K in {2,2,1} — broadcast-FMA on the VPU (MXU would be <2% used),
    # and no concatenation of the three inputs is needed.
    h = (w1p[:, 0:1] * x_p[0:1, :] + w1p[:, 1:2] * x_p[1:2, :]
         + w1l[:, 0:1] * x_l[0:1, :] + w1l[:, 1:2] * x_l[1:2, :]
         + w1r * x_r
         + b1_ref[...])                                    # (16, TB)

    # Layers 2-4: small MXU dots with lane-dense (·, TB) operands.
    h = jnp.dot(w2_ref[...], h, preferred_element_type=jnp.float32) + b2_ref[...]
    h = jnp.dot(w3_ref[...], h, preferred_element_type=jnp.float32) + b3_ref[...]
    h = jnp.dot(w4_ref[...], h, preferred_element_type=jnp.float32) + b4_ref[...]

    o_ref[...] = jnp.tanh(h).astype(o_ref.dtype)           # (1, TB) lane-dense


def nn_forward(pixel_coord, light_coord, average_rgb, params, *, tb=4096):
    lead_shape = pixel_coord.shape[:-1]
    n = 1
    for s in lead_shape:
        n *= s

    # Lane tile: multiple of 128, no larger than the 128-aligned batch size.
    tb = max(128, (tb // 128) * 128)
    n_128 = pl.cdiv(n, 128) * 128
    tb = min(tb, n_128)
    n_pad = pl.cdiv(n, tb) * tb
    grid = (n_pad // tb,)

    def to_lanes(x):
        # (..., f) -> (f, n_pad); transpose + tail pad fuse into one XLA copy.
        xt = x.reshape(-1, x.shape[-1]).astype(jnp.float32).T
        return jnp.pad(xt, ((0, 0), (0, n_pad - n)))

    px_t = to_lanes(pixel_coord)      # (2, n_pad)
    lt_t = to_lanes(light_coord)      # (2, n_pad)
    rgb_t = to_lanes(average_rgb)     # (1, n_pad)

    w1, b1, w2, b2, w3, b3, w4, b4 = params
    w1p, w1l, w1r = w1[:, 0:2], w1[:, 2:4], w1[:, 4:5]     # tiny static slices

    def full_spec(arr):
        # Whole small weight/bias resident in VMEM for every tile.
        return pl.BlockSpec(arr.shape, lambda i: (0, 0))

    def row_spec(f):
        return pl.BlockSpec((f, tb), lambda i: (0, i))

    out = pl.pallas_call(
        _mlp_kernel,
        out_shape=jax.ShapeDtypeStruct((1, n_pad), jnp.float32),
        grid_spec=pltpu.PrefetchScalarGridSpec(
            num_scalar_prefetch=0,
            grid=grid,
            in_specs=[
                row_spec(2), row_spec(2), row_spec(1),
                full_spec(w1p), full_spec(w1l), full_spec(w1r), full_spec(b1),
                full_spec(w2), full_spec(b2),
                full_spec(w3), full_spec(b3),
                full_spec(w4), full_spec(b4),
            ],
            out_specs=pl.BlockSpec((1, tb), lambda i: (0, i)),
        ),
        compiler_params=pltpu.CompilerParams(
            dimension_semantics=("parallel",),       # megacore-shard tiles (v7x)
            vmem_limit_bytes=32 * 1024 * 1024,       # headroom for large TB (v5e)
        ),
    )(px_t, lt_t, rgb_t, w1p, w1l, w1r, b1, w2, b2, w3, b3, w4, b4)

    gray = out[0, :n]                 # cheap slice of the lane-dense output
    return gray.reshape(*lead_shape, 1)


def init_params(key):
    """Deterministic init mimicking torch.nn.Linear (weights are (out, in))."""
    dims = [(5, 16), (16, 16), (16, 16), (16, 1)]
    params = []
    for fan_in, fan_out in dims:
        key, kw, kb = jax.random.split(key, 3)
        bound = 1.0 / jnp.sqrt(fan_in)
        w = jax.random.uniform(kw, (fan_out, fan_in), jnp.float32, -bound, bound)
        b = jax.random.uniform(kb, (fan_out, 1), jnp.float32, -bound, bound)
        params.extend([w, b])
    return tuple(params)


if __name__ == "__main__":
    key = jax.random.PRNGKey(0)
    kp, k1, k2, k3 = jax.random.split(key, 4)
    params = init_params(kp)

    # Small example batch of 256 samples.
    N = 256
    pixel_coord = jax.random.normal(k1, (N, 2), jnp.float32)
    light_coord = jax.random.normal(k2, (N, 2), jnp.float32)
    average_rgb = jax.random.normal(k3, (N, 1), jnp.float32)

    gray = nn_forward(pixel_coord, light_coord, average_rgb, params)
    jax.block_until_ready(gray)

    # Plain-JAX reference (torch Linear: y = x @ W.T + b).
    d_in = jnp.concatenate((pixel_coord, light_coord, average_rgb), -1)
    w1, b1, w2, b2, w3, b3, w4, b4 = params
    ref = d_in @ w1.T + b1.T
    ref = ref @ w2.T + b2.T
    ref = ref @ w3.T + b3.T
    ref = jnp.tanh(ref @ w4.T + b4.T)
    assert gray.shape == (N, 1)
    assert jnp.allclose(gray, ref, atol=2e-5), "mismatch vs reference"

    print("KERNEL_OK")
</pallas_src>

<mosaic_0001>
module attributes {stable_mosaic.version = 11 : i64} {
  func.func @_mlp_kernel(%arg0: i32, %arg1: memref<2x256xf32, #tpu.memory_space<vmem>>, %arg2: memref<2x256xf32, #tpu.memory_space<vmem>>, %arg3: memref<1x256xf32, #tpu.memory_space<vmem>>, %arg4: memref<16x2xf32, #tpu.memory_space<vmem>>, %arg5: memref<16x2xf32, #tpu.memory_space<vmem>>, %arg6: memref<16x1xf32, #tpu.memory_space<vmem>>, %arg7: memref<16x1xf32, #tpu.memory_space<vmem>>, %arg8: memref<16x16xf32, #tpu.memory_space<vmem>>, %arg9: memref<16x1xf32, #tpu.memory_space<vmem>>, %arg10: memref<16x16xf32, #tpu.memory_space<vmem>>, %arg11: memref<16x1xf32, #tpu.memory_space<vmem>>, %arg12: memref<1x16xf32, #tpu.memory_space<vmem>>, %arg13: memref<1x1xf32, #tpu.memory_space<vmem>>, %arg14: memref<1x256xf32, #tpu.memory_space<vmem>>) attributes {dimension_semantics = [#tpu.dimension_semantics<parallel>], iteration_bounds = array<i64: 1>, scalar_prefetch = 0 : i64, scratch_operands = 0 : i64, tpu.core_type = #tpu.core_type<tc>, window_params = [{transform_indices = @transform_0, window_bounds = array<i64: 2, 256>}, {transform_indices = @transform_1, window_bounds = array<i64: 2, 256>}, {transform_indices = @transform_2, window_bounds = array<i64: 1, 256>}, {pipeline_mode = #tpu.pipeline_mode<synchronous>, transform_indices = @transform_3, window_bounds = array<i64: 16, 2>}, {pipeline_mode = #tpu.pipeline_mode<synchronous>, transform_indices = @transform_4, window_bounds = array<i64: 16, 2>}, {pipeline_mode = #tpu.pipeline_mode<synchronous>, transform_indices = @transform_5, window_bounds = array<i64: 16, 1>}, {pipeline_mode = #tpu.pipeline_mode<synchronous>, transform_indices = @transform_6, window_bounds = array<i64: 16, 1>}, {pipeline_mode = #tpu.pipeline_mode<synchronous>, transform_indices = @transform_7, window_bounds = array<i64: 16, 16>}, {pipeline_mode = #tpu.pipeline_mode<synchronous>, transform_indices = @transform_8, window_bounds = array<i64: 16, 1>}, {pipeline_mode = #tpu.pipeline_mode<synchronous>, transform_indices = @transform_9, window_bounds = array<i64: 16, 16>}, {pipeline_mode = #tpu.pipeline_mode<synchronous>, transform_indices = @transform_10, window_bounds = array<i64: 16, 1>}, {pipeline_mode = #tpu.pipeline_mode<synchronous>, transform_indices = @transform_11, window_bounds = array<i64: 1, 16>}, {pipeline_mode = #tpu.pipeline_mode<synchronous>, transform_indices = @transform_12, window_bounds = array<i64: 1, 1>}, {transform_indices = @transform_13, window_bounds = array<i64: 1, 256>}]} {
    %c0 = arith.constant 0 : index
    %c0_0 = arith.constant 0 : index
    %0 = vector.load %arg1[%c0, %c0_0] : memref<2x256xf32, #tpu.memory_space<vmem>>, vector<2x256xf32>
    %c0_1 = arith.constant 0 : index
    %c0_2 = arith.constant 0 : index
    %1 = vector.load %arg2[%c0_1, %c0_2] : memref<2x256xf32, #tpu.memory_space<vmem>>, vector<2x256xf32>
    %c0_3 = arith.constant 0 : index
    %c0_4 = arith.constant 0 : index
    %2 = vector.load %arg3[%c0_3, %c0_4] : memref<1x256xf32, #tpu.memory_space<vmem>>, vector<1x256xf32>
    %c0_5 = arith.constant 0 : index
    %c0_6 = arith.constant 0 : index
    %3 = vector.load %arg4[%c0_5, %c0_6] : memref<16x2xf32, #tpu.memory_space<vmem>>, vector<16x2xf32>
    %c0_7 = arith.constant 0 : index
    %c0_8 = arith.constant 0 : index
    %4 = vector.load %arg5[%c0_7, %c0_8] : memref<16x2xf32, #tpu.memory_space<vmem>>, vector<16x2xf32>
    %c0_9 = arith.constant 0 : index
    %c0_10 = arith.constant 0 : index
    %5 = vector.load %arg6[%c0_9, %c0_10] : memref<16x1xf32, #tpu.memory_space<vmem>>, vector<16x1xf32>
    %6 = vector.extract_strided_slice %3 {offsets = [0, 0], sizes = [16, 1], strides = [1, 1]} : vector<16x2xf32> to vector<16x1xf32>
    %7 = vector.extract_strided_slice %0 {offsets = [0, 0], sizes = [1, 256], strides = [1, 1]} : vector<2x256xf32> to vector<1x256xf32>
    %8 = vector.broadcast %6 : vector<16x1xf32> to vector<16x256xf32>
    %9 = vector.broadcast %7 : vector<1x256xf32> to vector<16x256xf32>
    %10 = arith.mulf %8, %9 : vector<16x256xf32>
    %11 = vector.extract_strided_slice %3 {offsets = [0, 1], sizes = [16, 1], strides = [1, 1]} : vector<16x2xf32> to vector<16x1xf32>
    %12 = vector.extract_strided_slice %0 {offsets = [1, 0], sizes = [1, 256], strides = [1, 1]} : vector<2x256xf32> to vector<1x256xf32>
    %13 = vector.broadcast %11 : vector<16x1xf32> to vector<16x256xf32>
    %14 = vector.broadcast %12 : vector<1x256xf32> to vector<16x256xf32>
    %15 = arith.mulf %13, %14 : vector<16x256xf32>
    %16 = arith.addf %10, %15 : vector<16x256xf32>
    %17 = vector.extract_strided_slice %4 {offsets = [0, 0], sizes = [16, 1], strides = [1, 1]} : vector<16x2xf32> to vector<16x1xf32>
    %18 = vector.extract_strided_slice %1 {offsets = [0, 0], sizes = [1, 256], strides = [1, 1]} : vector<2x256xf32> to vector<1x256xf32>
    %19 = vector.broadcast %17 : vector<16x1xf32> to vector<16x256xf32>
    %20 = vector.broadcast %18 : vector<1x256xf32> to vector<16x256xf32>
    %21 = arith.mulf %19, %20 : vector<16x256xf32>
    %22 = arith.addf %16, %21 : vector<16x256xf32>
    %23 = vector.extract_strided_slice %4 {offsets = [0, 1], sizes = [16, 1], strides = [1, 1]} : vector<16x2xf32> to vector<16x1xf32>
    %24 = vector.extract_strided_slice %1 {offsets = [1, 0], sizes = [1, 256], strides = [1, 1]} : vector<2x256xf32> to vector<1x256xf32>
    %25 = vector.broadcast %23 : vector<16x1xf32> to vector<16x256xf32>
    %26 = vector.broadcast %24 : vector<1x256xf32> to vector<16x256xf32>
    %27 = arith.mulf %25, %26 : vector<16x256xf32>
    %28 = arith.addf %22, %27 : vector<16x256xf32>
    %29 = vector.broadcast %5 : vector<16x1xf32> to vector<16x256xf32>
    %30 = vector.broadcast %2 : vector<1x256xf32> to vector<16x256xf32>
    %31 = arith.mulf %29, %30 : vector<16x256xf32>
    %32 = arith.addf %28, %31 : vector<16x256xf32>
    %c0_11 = arith.constant 0 : index
    %c0_12 = arith.constant 0 : index
    %33 = vector.load %arg7[%c0_11, %c0_12] : memref<16x1xf32, #tpu.memory_space<vmem>>, vector<16x1xf32>
    %34 = vector.broadcast %33 : vector<16x1xf32> to vector<16x256xf32>
    %35 = arith.addf %32, %34 : vector<16x256xf32>
    %c0_13 = arith.constant 0 : index
    %c0_14 = arith.constant 0 : index
    %36 = vector.load %arg8[%c0_13, %c0_14] : memref<16x16xf32, #tpu.memory_space<vmem>>, vector<16x16xf32>
    %cst = arith.constant dense<0.000000e+00> : vector<16x256xf32>
    %37 = tpu.matmul %36, %35, %cst {dimension_numbers = #tpu.dot_dimension_numbers<[1], [0], [0], [1], [0, 0, 1, 1], [], []>} : vector<16x16xf32>, vector<16x256xf32>, vector<16x256xf32> -> vector<16x256xf32>
    %c0_15 = arith.constant 0 : index
    %c0_16 = arith.constant 0 : index
    %38 = vector.load %arg9[%c0_15, %c0_16] : memref<16x1xf32, #tpu.memory_space<vmem>>, vector<16x1xf32>
    %39 = vector.broadcast %38 : vector<16x1xf32> to vector<16x256xf32>
    %40 = arith.addf %37, %39 : vector<16x256xf32>
    %c0_17 = arith.constant 0 : index
    %c0_18 = arith.constant 0 : index
    %41 = vector.load %arg10[%c0_17, %c0_18] : memref<16x16xf32, #tpu.memory_space<vmem>>, vector<16x16xf32>
    %cst_19 = arith.constant dense<0.000000e+00> : vector<16x256xf32>
    %42 = tpu.matmul %41, %40, %cst_19 {dimension_numbers = #tpu.dot_dimension_numbers<[1], [0], [0], [1], [0, 0, 1, 1], [], []>} : vector<16x16xf32>, vector<16x256xf32>, vector<16x256xf32> -> vector<16x256xf32>
    %c0_20 = arith.constant 0 : index
    %c0_21 = arith.constant 0 : index
    %43 = vector.load %arg11[%c0_20, %c0_21] : memref<16x1xf32, #tpu.memory_space<vmem>>, vector<16x1xf32>
    %44 = vector.broadcast %43 : vector<16x1xf32> to vector<16x256xf32>
    %45 = arith.addf %42, %44 : vector<16x256xf32>
    %c0_22 = arith.constant 0 : index
    %c0_23 = arith.constant 0 : index
    %46 = vector.load %arg12[%c0_22, %c0_23] : memref<1x16xf32, #tpu.memory_space<vmem>>, vector<1x16xf32>
    %cst_24 = arith.constant dense<0.000000e+00> : vector<1x256xf32>
    %47 = tpu.matmul %46, %45, %cst_24 {dimension_numbers = #tpu.dot_dimension_numbers<[1], [0], [0], [1], [0, 0, 1, 1], [], []>} : vector<1x16xf32>, vector<16x256xf32>, vector<1x256xf32> -> vector<1x256xf32>
    %c0_25 = arith.constant 0 : index
    %c0_26 = arith.constant 0 : index
    %48 = vector.load %arg13[%c0_25, %c0_26] : memref<1x1xf32, #tpu.memory_space<vmem>>, vector<1x1xf32>
    %49 = vector.broadcast %48 : vector<1x1xf32> to vector<1x256xf32>
    %50 = arith.addf %47, %49 : vector<1x256xf32>
    %51 = math.tanh %50 : vector<1x256xf32>
    %c0_27 = arith.constant 0 : index
    %c0_28 = arith.constant 0 : index
    %52 = vector.load %arg14[%c0_27, %c0_28] : memref<1x256xf32, #tpu.memory_space<vmem>>, vector<1x256xf32>
    tpu.vector_store %arg14[%c0_27, %c0_28], %51 {strides = array<i32>} : memref<1x256xf32, #tpu.memory_space<vmem>>, vector<1x256xf32>,
    return
  }
  func.func @transform_0(%arg0: i32) -> (i32, i32) {
    %c0_i32 = arith.constant 0 : i32
    %c0_i32_0 = arith.constant 0 : i32
    return %c0_i32, %arg0 : i32, i32
  }
  func.func @transform_1(%arg0: i32) -> (i32, i32) {
    %c0_i32 = arith.constant 0 : i32
    %c0_i32_0 = arith.constant 0 : i32
    return %c0_i32, %arg0 : i32, i32
  }
  func.func @transform_2(%arg0: i32) -> (i32, i32) {
    %c0_i32 = arith.constant 0 : i32
    %c0_i32_0 = arith.constant 0 : i32
    return %c0_i32, %arg0 : i32, i32
  }
  func.func @transform_3(%arg0: i32) -> (i32, i32) {
    %c0_i32 = arith.constant 0 : i32
    %c0_i32_0 = arith.constant 0 : i32
    %c0_i32_1 = arith.constant 0 : i32
    return %c0_i32, %c0_i32_0 : i32, i32
  }
  func.func @transform_4(%arg0: i32) -> (i32, i32) {
    %c0_i32 = arith.constant 0 : i32
    %c0_i32_0 = arith.constant 0 : i32
    %c0_i32_1 = arith.constant 0 : i32
    return %c0_i32, %c0_i32_0 : i32, i32
  }
  func.func @transform_5(%arg0: i32) -> (i32, i32) {
    %c0_i32 = arith.constant 0 : i32
    %c0_i32_0 = arith.constant 0 : i32
    %c0_i32_1 = arith.constant 0 : i32
    return %c0_i32, %c0_i32_0 : i32, i32
  }
  func.func @transform_6(%arg0: i32) -> (i32, i32) {
    %c0_i32 = arith.constant 0 : i32
    %c0_i32_0 = arith.constant 0 : i32
    %c0_i32_1 = arith.constant 0 : i32
    return %c0_i32, %c0_i32_0 : i32, i32
  }
  func.func @transform_7(%arg0: i32) -> (i32, i32) {
    %c0_i32 = arith.constant 0 : i32
    %c0_i32_0 = arith.constant 0 : i32
    %c0_i32_1 = arith.constant 0 : i32
    return %c0_i32, %c0_i32_0 : i32, i32
  }
  func.func @transform_8(%arg0: i32) -> (i32, i32) {
    %c0_i32 = arith.constant 0 : i32
    %c0_i32_0 = arith.constant 0 : i32
    %c0_i32_1 = arith.constant 0 : i32
    return %c0_i32, %c0_i32_0 : i32, i32
  }
  func.func @transform_9(%arg0: i32) -> (i32, i32) {
    %c0_i32 = arith.constant 0 : i32
    %c0_i32_0 = arith.constant 0 : i32
    %c0_i32_1 = arith.constant 0 : i32
    return %c0_i32, %c0_i32_0 : i32, i32
  }
  func.func @transform_10(%arg0: i32) -> (i32, i32) {
    %c0_i32 = arith.constant 0 : i32
    %c0_i32_0 = arith.constant 0 : i32
    %c0_i32_1 = arith.constant 0 : i32
    return %c0_i32, %c0_i32_0 : i32, i32
  }
  func.func @transform_11(%arg0: i32) -> (i32, i32) {
    %c0_i32 = arith.constant 0 : i32
    %c0_i32_0 = arith.constant 0 : i32
    %c0_i32_1 = arith.constant 0 : i32
    return %c0_i32, %c0_i32_0 : i32, i32
  }
  func.func @transform_12(%arg0: i32) -> (i32, i32) {
    %c0_i32 = arith.constant 0 : i32
    %c0_i32_0 = arith.constant 0 : i32
    %c0_i32_1 = arith.constant 0 : i32
    return %c0_i32, %c0_i32_0 : i32, i32
  }
  func.func @transform_13(%arg0: i32) -> (i32, i32) {
    %c0_i32 = arith.constant 0 : i32
    %c0_i32_0 = arith.constant 0 : i32
    return %c0_i32, %arg0 : i32, i32
  }
}

</mosaic_0001>

<bundles_post_ra>
// kernel: tpu_custom_call.1
= control target key start
LH: loop header
LB: loop body
LE: loop exit
PB: predicated region body
PF: predicated region fallthrough
CT: control target
= control target key end

     0   :  { %s598_s0 = inlined_call_operand.vmem [shape: f32[2,256], index: 0, kind: input, shape index: {}]   ;;  %s599_s1 = inlined_call_operand.vmem [shape: f32[2,256], index: 1, kind: input, shape index: {}]   ;;  %s600_s2 = inlined_call_operand.vmem [shape: f32[1,256], index: 2, kind: input, shape index: {}]   ;;  %s601_s3 = inlined_call_operand.vmem [shape: f32[16,2], index: 3, kind: input, shape index: {}]   ;;  %s602_s4 = inlined_call_operand.vmem [shape: f32[16,2], index: 4, kind: input, shape index: {}]   ;;  %s603_s5 = inlined_call_operand.vmem [shape: f32[16,1], index: 5, kind: input, shape index: {}]   ;;  %s604_s6 = inlined_call_operand.vmem [shape: f32[16,1], index: 6, kind: input, shape index: {}]   ;;  %s605_s7 = inlined_call_operand.vmem [shape: f32[16,16], index: 7, kind: input, shape index: {}]   ;;  %s606_s8 = inlined_call_operand.vmem [shape: f32[16,1], index: 8, kind: input, shape index: {}]   ;;  %s607_s9 = inlined_call_operand.vmem [shape: f32[16,16], index: 9, kind: input, shape index: {}]   ;;  %s608_s10 = inlined_call_operand.vmem [shape: f32[16,1], index: 10, kind: input, shape index: {}]   ;;  %s609_s11 = inlined_call_operand.vmem [shape: f32[1,16], index: 11, kind: input, shape index: {}]   ;;  %s610_s12 = inlined_call_operand.<no memory space> [shape: f32[1,1], index: 12, kind: input, shape index: {}]   ;;  %s611_s13 = inlined_call_operand.hbm [shape: f32[1,256], index: 13, kind: output, shape index: {}]  }
   0x1   :  { %v18_v0 = vstv %s610_s12 }
   0x2   :  { %19 = vst [vmem:[#allocation2] sm:$0x1] %v18_v0 }
   0x3   :  { %v51_v1 = vld [vmem:[%s601_s3 + $0x8] sm:$0xff]  ;;  %v50_v2 = vld [vmem:[%s601_s3] sm:$0xff]  ;;  %v449_v3 = vmov 1   ;;  %v450_v4 = vmov 0  }
   0x4   :  { %411 = vset.pattern.permute.xlu0 %v449_v3  ;;  %413 = vset.pattern.permute.xlu1 %v450_v4  ;;  %v53_v5 = vld [vmem:[%s602_s4 + $0x8] sm:$0xff] }
   0x5   :  { %82 = vperm.xlu0 %411, %v51_v1   ;;  %58 = vperm.xlu1 %413, %v50_v2  }
   0x6   :  { %20 = vsyncpa [#allocation4], 0  ;;  %415 = vset.pattern.permute.xlu2 %v450_v4  ;;  %v52_v6 = vld [vmem:[%s602_s4] sm:$0xff]  ;;  %v55_v7 = vld [vmem:[%s603_s5 + $0x8] sm:$0xff]  ;;  %vm199_vm0 = vcmask 130048   ;;  %vm374_vm1 = vcmask 1040384  }
   0x7   :  { %106 = vperm.xlu2 %415, %v53_v5   ;;  %v187_v8 = vld [vmem:[%s606_s8] sm:$0xff]  ;;  %v170_v10 = vld [vmem:[%s604_s6 + $0x8] sm:$0xff] }
   0x8   :  { %v54_v9 = vld [vmem:[%s603_s5] sm:$0xff]  ;;  %v188_v13 = vld [vmem:[%s606_s8 + $0x8] sm:$0xff] }
   0x9   :  { %v319_v11 = vld [vmem:[#allocation2] sm:$0x1]  ;;  %v255_v14 = vld [vmem:[%s608_s10 + $0x8] sm:$0xff] }
   0xa   :  { %v169_v12 = vld [vmem:[%s604_s6] sm:$0xff] }
   0xb   :  { %v254_v15 = vld [vmem:[%s608_s10] sm:$0xff] }
   0xc   :  { %v47_v18 = vld [vmem:[%s598_s0] sm:$0xf] }
   0xd   :  { %412 = vset.pattern.permute.xlu0 %v450_v4  ;;  %414 = vset.pattern.permute.xlu1 %v449_v3  ;;  %v85_v20 = vperm.slane %v47_v18, 1  ;;  %v86_v21 = vperm.slane %v47_v18, 3  ;;  %v48_v23 = vld [vmem:[%s599_s1] sm:$0xf]  ;;  %v67_v24 = vperm.slane %v47_v18, 0  ;;  %v68_v25 = vperm.slane %v47_v18, 2 }
   0xe   :  { %63 = vperm.xlu0 %412, %v51_v1   ;;  %78 = vperm.xlu1 %414, %v50_v2   ;;  %v110_v28 = vperm.slane %v48_v23, 0  ;;  %v111_v29 = vperm.slane %v48_v23, 2  ;;  %v49_v40 = vld [vmem:[%s600_s2] sm:$0x3]  ;;  %v132_v41 = vperm.slane %v48_v23, 1  ;;  %v133_v42 = vperm.slane %v48_v23, 3 }
   0xf   :  { %101 = vperm.xlu2 %415, %v52_v6   ;;  %v89_v26 = vperm.slane %v85_v20, 1  ;;  %v90_v27 = vperm.slane %v86_v21, 1  ;;  %v71_v30 = vperm.slane %v67_v24, 0  ;;  %v72_v31 = vperm.slane %v68_v25, 0 }
  0x10   :  { %v114_v38 = vperm.slane %v110_v28, 0  ;;  %v115_v39 = vperm.slane %v111_v29, 0  ;;  %v157_v46 = vperm.slane %v49_v40, 0  ;;  %v158_v47 = vperm.slane %v49_v40, 1 }
  0x11   :  { %v136_v50 = vperm.slane %v132_v41, 1  ;;  %v137_v51 = vperm.slane %v133_v42, 1 }
  0x16   :  { %153 = vperm.xlu0 %412, %v55_v7   ;;  %129 = vperm.xlu1 %414, %v53_v5  }
  0x17   :  { %416 = vset.pattern.permute.xlu2 %v449_v3 }
  0x18   :  { %125 = vperm.xlu2 %416, %v52_v6  }
  0x1e   :  { %191 = vperm.xlu0 %412, %v187_v8   ;;  %417 = vset.pattern.permute.xlu1 %v450_v4 }
  0x1f   :  { %148 = vperm.xlu1 %417, %v54_v9  }
  0x20   :  { %418 = vset.pattern.permute.xlu2 %v450_v4 }
  0x21   :  { %178 = vperm.xlu2 %418, %v170_v10  }
  0x26   :  { %322 = vperm.xlu0 %412, %v319_v11  }
  0x27   :  { %173 = vperm.xlu1 %417, %v169_v12  }
  0x29   :  { %196 = vperm.xlu2 %418, %v188_v13  }
  0x2f   :  { %263 = vperm.xlu1 %417, %v255_v14  }
  0x31   :  { %258 = vperm.xlu2 %418, %v254_v15  }
  0x61   :  { %v107_v16 = vpop.permute.xlu2 %106 }
  0x62   :  { %v118_v48 = vmul.f32 %v114_v38, %v107_v16  ;;  %v119_v49 = vmul.f32 %v115_v39, %v107_v16 }
  0x69   :  { %v102_v22 = vpop.permute.xlu2 %101 }
  0x6a   :  { %v116_v9 = vmul.f32 %v114_v38, %v102_v22  ;;  %v117_v10 = vmul.f32 %v115_v39, %v102_v22  ;;  %v185_v22 = vld [vmem:[%s605_s7] sm:$0xff]  ;;  %v253_v38 = vld [vmem:[%s607_s9 + $0x8] sm:$0xff] }
  0x72   :  { %v126_v43 = vpop.permute.xlu2 %125 }
  0x73   :  { %v138_v12 = vmul.f32 %v136_v50, %v126_v43  ;;  %v139_v13 = vmul.f32 %v137_v51, %v126_v43 }
  0x77   :  { %v59_v17 = vpop.permute.xlu1 %58  ;;  %v83_v19 = vpop.permute.xlu0 %82 }
  0x78   :  { %v93_v32 = vmul.f32 %v89_v26, %v83_v19  ;;  %v94_v33 = vmul.f32 %v90_v27, %v83_v19  ;;  %v73_v0 = vmul.f32 %v71_v30, %v59_v17  ;;  %v74_v1 = vmul.f32 %v72_v31, %v59_v17 }
  0x7b   :  { %v179_v6 = vpop.permute.xlu2 %178 }
  0x80   :  { %v64_v34 = vpop.permute.xlu0 %63  ;;  %v79_v35 = vpop.permute.xlu1 %78 }
  0x81   :  { %v75_v36 = vmul.f32 %v71_v30, %v64_v34  ;;  %v76_v37 = vmul.f32 %v72_v31, %v64_v34  ;;  %v91_v60 = vmul.f32 %v89_v26, %v79_v35  ;;  %v92_v61 = vmul.f32 %v90_v27, %v79_v35  ;;  %v186_v26 = vld [vmem:[%s605_s7 + $0x8] sm:$0xff] }
  0x83   :  { %v97_v44 = vadd.f32 %v93_v32, %v75_v36  ;;  %v98_v45 = vadd.f32 %v94_v33, %v76_v37  ;;  %v95_v4 = vadd.f32 %v91_v60, %v73_v0  ;;  %v96_v5 = vadd.f32 %v92_v61, %v74_v1  ;;  %v197_v29 = vpop.permute.xlu2 %196  ;;  %v252_v37 = vld [vmem:[%s607_s9] sm:$0xff]  ;;  %s451_s9 = smov [#allocation3]  }
  0x84   :  { %s387_s20 = sshll.u32 %s451_s9, 4  ;;  %s388_s20 = int_to_ptr.vmem [resolvable:$true] %s387_s20 }
  0x85   :  { %v122_v54 = vadd.f32 %v118_v48, %v97_v44  ;;  %v123_v55 = vadd.f32 %v119_v49, %v98_v45  ;;  %v120_v14 = vadd.f32 %v116_v9, %v95_v4  ;;  %v121_v15 = vadd.f32 %v117_v10, %v96_v5  ;;  %v318_v49 = vld [vmem:[%s609_s11] sm:$0x1]  ;;  %s389_s11 = sshll.u32 %s611_s13, 4  ;;  %s390_s11 = int_to_ptr.hbm [resolvable:$true] %s389_s11 }
  0x87   :  { %v142_v19 = vadd.f32 %v138_v12, %v120_v14  ;;  %v143_v17 = vadd.f32 %v139_v13, %v121_v15 }
  0x88   :  { %v154_v52 = vpop.permute.xlu0 %153  ;;  %v130_v53 = vpop.permute.xlu1 %129 }
  0x89   :  { %v163_v56 = vmul.f32 %v157_v46, %v154_v52  ;;  %v164_v57 = vmul.f32 %v158_v47, %v154_v52  ;;  %v140_v58 = vmul.f32 %v136_v50, %v130_v53  ;;  %v141_v59 = vmul.f32 %v137_v51, %v130_v53 }
  0x8b   :  { %v144_v62 = vadd.f32 %v140_v58, %v122_v54  ;;  %v145_v63 = vadd.f32 %v141_v59, %v123_v55 }
  0x8d   :  { %v167_v2 = vadd.f32 %v163_v56, %v144_v62  ;;  %v168_v3 = vadd.f32 %v164_v57, %v145_v63  ;;  %v377_v56 = vlaneseq }
  0x8f   :  { %v183_v7 = vadd.f32 %v179_v6, %v167_v2  ;;  %v184_v8 = vadd.f32 %v179_v6, %v168_v3  ;;  %vm379_vm2 = vcmp.lt.s32.totalorder %v377_v56, 256 }
  0x90   :  { %v192_v34 = vpop.permute.xlu0 %191 }
  0x91   :  { %v149_v11 = vpop.permute.xlu1 %148  ;;  %220 = vmatpush.msra.mxu0 %v183_v7  ;;  %243 = vmatpush.msra.mxu1 %v184_v8 }
  0x92   :  { %v161_v16 = vmul.f32 %v157_v46, %v149_v11  ;;  %v162_v18 = vmul.f32 %v158_v47, %v149_v11  ;;  %v259_v46 = vpop.permute.xlu2 %258 }
  0x94   :  { %v165_v20 = vadd.f32 %v161_v16, %v142_v19  ;;  %v166_v21 = vadd.f32 %v162_v18, %v143_v17 }
  0x98   :  { %v323_v50 = vpop.permute.xlu0 %322 }
  0x99   :  { %v174_v23 = vpop.permute.xlu1 %173  ;;  %v325_v51 = vperm.slane %v323_v50, 0 }
  0x9a   :  { %v181_v24 = vadd.f32 %v174_v23, %v165_v20  ;;  %v182_v25 = vadd.f32 %v174_v23, %v166_v21 }
  0x9c   :  { %221 = vmatpush.msra.mxu0 %v181_v24  ;;  %244 = vmatpush.msra.mxu1 %v182_v25 }
  0x9d   :  { %398 = vmatmul.msk.f32.vlgmr.msra.gmra.mxu0 %vm199_vm0, %v185_v22  ;;  %400 = vmatmul.msk.f32.vlgmr.msra.gmra.mxu1 %vm199_vm0, %v185_v22 }
  0xa1   :  { %v264_v41 = vpop.permute.xlu1 %263 }
  0xa5   :  { %399 = vmatmul.msk.f32.gmra.mxu0 %vm199_vm0, %v186_v26  ;;  %401 = vmatmul.msk.f32.gmra.mxu1 %vm199_vm0, %v186_v26 }
 0x11a   :  { %v223_v27 = vpop.f32.mrf.mxu0  ;;  %v246_v28 = vpop.f32.mrf.mxu1 }
 0x11b   :  { %v224_v35 = vadd.f32 %v223_v27, %v192_v34  ;;  %v247_v36 = vadd.f32 %v246_v28, %v192_v34 }
 0x122   :  { %v226_v30 = vpop.f32.mrf.mxu0  ;;  %v249_v31 = vpop.f32.mrf.mxu1 }
 0x123   :  { %v227_v32 = vadd.f32 %v226_v30, %v197_v29  ;;  %v250_v33 = vadd.f32 %v249_v31, %v197_v29 }
 0x125   :  { %286 = vmatpush.msra.mxu2 %v227_v32  ;;  %309 = vmatpush.msra.mxu3 %v250_v33 }
 0x127   :  { %287 = vmatpush.msra.mxu2 %v224_v35  ;;  %310 = vmatpush.msra.mxu3 %v247_v36 }
 0x128   :  { %402 = vmatmul.msk.f32.vlgmr.msra.gmra.mxu2 %vm199_vm0, %v252_v37  ;;  %404 = vmatmul.msk.f32.vlgmr.msra.gmra.mxu3 %vm199_vm0, %v252_v37 }
 0x130   :  { %403 = vmatmul.msk.f32.gmra.mxu2 %vm199_vm0, %v253_v38  ;;  %405 = vmatmul.msk.f32.gmra.mxu3 %vm199_vm0, %v253_v38 }
 0x1ab   :  { %v289_v39 = vpop.f32.mrf.mxu2  ;;  %v312_v40 = vpop.f32.mrf.mxu3 }
 0x1ac   :  { %v290_v47 = vadd.f32 %v289_v39, %v259_v46  ;;  %v313_v48 = vadd.f32 %v312_v40, %v259_v46 }
 0x1b3   :  { %v292_v42 = vpop.f32.mrf.mxu2  ;;  %v315_v43 = vpop.f32.mrf.mxu3 }
 0x1b4   :  { %v293_v44 = vadd.f32 %v292_v42, %v264_v41  ;;  %v316_v45 = vadd.f32 %v315_v43, %v264_v41 }
 0x1b6   :  { %343 = vmatpush.msrb.mxu0 %v293_v44  ;;  %363 = vmatpush.msrb.mxu1 %v316_v45 }
 0x1b8   :  { %344 = vmatpush.msrb.mxu0 %v290_v47  ;;  %364 = vmatpush.msrb.mxu1 %v313_v48 }
 0x1b9   :  { %406 = vmatmul.msk.f32.vlgmr.msrb.gmra.mxu0 %vm199_vm0, %v318_v49  ;;  %407 = vmatmul.msk.f32.vlgmr.msrb.gmra.mxu1 %vm199_vm0, %v318_v49 }
 0x236   :  { %v346_v52 = vpop.f32.mrf.mxu0  ;;  %v366_v53 = vpop.f32.mrf.mxu1 }
 0x237   :  { %v367_v54 = vadd.f32 %v366_v53, %v325_v51  ;;  %v347_v55 = vadd.f32 %v346_v52, %v325_v51 }
 0x239   :  { %419 = vtanh.f32 %v367_v54 }
 0x23a   :  { %421 = vtanh.f32 %v347_v55 }
 0x23f   :  { %v420_v57 = vpop.eup %419 }
 0x240   :  { %v373_v58 = vrot.slane %v420_v57, 7  ;;  %v422_v59 = vpop.eup %421 }
 0x242   :  { %v375_v60 = vsel %vm374_vm1, %v422_v59, %v373_v58 }
 0x243   :  { %381 = vst.msk [vmem:[#allocation3] sm:$0x3] %vm379_vm2, %v375_v60 }
 0x244   :  { %392 = dma.vmem_to_hbm [thread:$0]  %s388_s20, 32, %s390_s11, [#allocation4]  }
 0x245   :  { %447 = dma.done.wait [#allocation4], 32  }
 0x246   :  { %448 = vsyncadd [#allocation4], 4294967264 }
 0x247   :  { %397 = vsyncpa [#allocation4], 1 }

</bundles_post_ra>
